<compile_context>
chip_gen: v5e
topology: v5e:2x2
jax: 0.10.0
libtpu: 0.0.40
codegen_flags: <defaults>
</compile_context>

<pallas_src>
import jax
import jax.numpy as jnp
import numpy as np
from jax.experimental import pallas as pl
from jax.experimental.pallas import tpu as pltpu

THETA = 0.7
EPS = 1e-5


# ----------------------------- Pallas kernel ------------------------------ #
def _make_cdc_vg_kernel(B, C, H, W):
    HW = H * W
    N = B * HW
    inv_n = np.float32(1.0 / N)
    taps = [(dy - 1, dx - 1) for dy in range(3) for dx in range(3)]

    def kernel(x_ref, w1_ref, w2_ref, mask_ref,
               bn1g_ref, bn1b_ref, bn2g_ref, bn2b_ref,
               prelu_ref, out_ref):

        def shifted_taps(src):
            # src: (C, N) batch-fused slab -> (9C, N) im2col patch matrix.
            # Spatial shifts are lane rotations (XLU slot, not VALU); the
            # precomputed masks zero padding taps AND cross-image bleed, so
            # rolling across the fused batch boundary is safe.
            pieces = []
            for k, (oy, ox) in enumerate(taps):
                d = oy * W + ox
                if d == 0:                       # center tap: no shift, no mask
                    pieces.append(src)
                else:
                    rolled = pltpu.roll(src, shift=(-d) % N, axis=1)
                    pieces.append(rolled * mask_ref[k])    # (1, N) broadcasts
            return jnp.concatenate(pieces, axis=0)

        def bn_prelu(y, gamma, beta, a):
            # y: (C, N); one-pass training-mode BN (biased var), folded into a
            # single per-channel scale/shift, then PReLU.
            s = jnp.sum(y, axis=1, keepdims=True)
            ss = jnp.sum(y * y, axis=1, keepdims=True)
            mean = s * inv_n
            var = ss * inv_n - mean * mean
            scale = jax.lax.rsqrt(var + EPS) * gamma       # EUP rsqrt
            shift = beta - mean * scale
            yn = y * scale + shift
            return jnp.where(yn >= 0, yn, a * yn)

        # ---- stage 1: folded Conv2d_cd -> BN -> PReLU (one K=9C matmul) ----
        p1 = shifted_taps(x_ref[...])                               # (9C, N)
        y0 = jnp.dot(w1_ref[...], p1, preferred_element_type=jnp.float32)
        y0 = bn_prelu(y0, bn1g_ref[...], bn1b_ref[...], prelu_ref[0])

        # ---- stage 2: folded 0.5*(HoriVeri + Diag) conv -> BN -> PReLU ----
        p2 = shifted_taps(y0)                                       # (9C, N)
        y = jnp.dot(w2_ref[...], p2, preferred_element_type=jnp.float32)
        y = bn_prelu(y, bn2g_ref[...], bn2b_ref[...], prelu_ref[1])

        # ---- residual add: re-load x from VMEM (not held across stages) ----
        out_ref[...] = (y + x_ref[...]).astype(out_ref.dtype)

    return kernel


# ------------------------------ JAX glue ----------------------------------- #
def _fold_weights(params, theta):
    """Fold CDC ops into 3x3 convs and flatten to matmul layout (C_out, 9*C_in)."""
    w_cdc, w_h, w_d = params['w_cdc'], params['w_h'], params['w_d']
    C_out, C_in = w_cdc.shape[0], w_cdc.shape[1]
    z = jnp.zeros((C_out, C_in, 1), w_h.dtype)

    # Conv2d_cd: plain 3x3; center tap -= theta * sum(w)
    wce = w_cdc.at[:, :, 1, 1].add(-theta * w_cdc.sum((2, 3)))

    # Conv2d_Hori_Veri_Cross: (1,5) weights scattered into a "+" pattern
    wh3 = jnp.concatenate(
        [z, w_h[:, :, :, 0], z, w_h[:, :, :, 1], w_h[:, :, :, 2],
         w_h[:, :, :, 3], z, w_h[:, :, :, 4], z],
        axis=2).reshape(C_out, C_in, 3, 3)
    whe = wh3.at[:, :, 1, 1].add(-theta * w_h.sum((2, 3)))

    # Conv2d_Diag_Cross: (1,5) weights scattered into an "x" pattern
    wd3 = jnp.concatenate(
        [w_d[:, :, :, 0], z, w_d[:, :, :, 1], z, w_d[:, :, :, 2], z,
         w_d[:, :, :, 3], z, w_d[:, :, :, 4]],
        axis=2).reshape(C_out, C_in, 3, 3)
    wde = wd3.at[:, :, 1, 1].add(-theta * w_d.sum((2, 3)))

    w2e = 0.5 * (whe + wde)   # 0.5*conv(Wh)+0.5*conv(Wd) == conv(0.5*(Wh+Wd))

    def to_mat(w):  # OIHW -> (C_out, 9*C_in), tap index k=dy*3+dx major, ci minor
        return jnp.transpose(w, (0, 2, 3, 1)).reshape(C_out, 9 * C_in)

    return to_mat(wce), to_mat(w2e)


def _border_masks(B, H, W):
    """(9, 1, B*H*W) f32 validity masks for the 9 taps, tiled per batch image."""
    yy, xx = np.meshgrid(np.arange(H), np.arange(W), indexing='ij')
    masks = np.empty((9, 1, H * W), np.float32)
    k = 0
    for dy in range(3):
        for dx in range(3):
            oy, ox = dy - 1, dx - 1
            valid = ((yy + oy >= 0) & (yy + oy < H) &
                     (xx + ox >= 0) & (xx + ox < W))
            masks[k, 0, :] = valid.reshape(-1).astype(np.float32)
            k += 1
    return np.tile(masks, (1, 1, B))   # identical per image; tiled over batch


def _pick_vmem_limit():
    """~112 MiB on v5e/v6e (128 MiB physical), ~48 MiB on v7x (64 MiB physical)."""
    cap = 64 * 1024 * 1024
    try:
        cap = int(getattr(pltpu.get_tpu_info(), "vmem_capacity_bytes", cap))
    except Exception:
        pass
    return int(min(max(cap - 16 * 1024 * 1024, 32 * 1024 * 1024),
                   112 * 1024 * 1024))


@jax.jit
def cdc_vg_pallas(x_nchw, params):
    B, C, H, W = x_nchw.shape
    N = B * H * W
    w1, w2 = _fold_weights(params, THETA)
    masks = jnp.asarray(_border_masks(B, H, W))
    # Batch fused onto the lane axis: (C, B*H*W).
    x2 = jnp.transpose(x_nchw, (1, 0, 2, 3)).reshape(C, N)

    bn1g = params['bn1_gamma'].reshape(C, 1).astype(jnp.float32)
    bn1b = params['bn1_beta'].reshape(C, 1).astype(jnp.float32)
    bn2g = params['bn2_gamma'].reshape(C, 1).astype(jnp.float32)
    bn2b = params['bn2_beta'].reshape(C, 1).astype(jnp.float32)
    prelu = jnp.stack([params['a1'], params['a2']]).astype(jnp.float32)

    vmem = pl.BlockSpec(memory_space=pltpu.MemorySpace.VMEM)
    smem = pl.BlockSpec(memory_space=pltpu.MemorySpace.SMEM)

    flops = int(2 * 2 * C * (9 * C) * N)
    bytes_accessed = int(4 * (2 * C * N + 2 * C * 9 * C + 9 * N + 4 * C + 2))

    out = pl.pallas_call(
        _make_cdc_vg_kernel(B, C, H, W),
        out_shape=jax.ShapeDtypeStruct((C, N), jnp.float32),
        in_specs=[vmem] * 8 + [smem],
        out_specs=vmem,
        compiler_params=pltpu.CompilerParams(vmem_limit_bytes=_pick_vmem_limit()),
        cost_estimate=pl.CostEstimate(flops=flops, transcendentals=2 * C,
                                      bytes_accessed=bytes_accessed),
    )(x2, w1, w2, masks, bn1g, bn1b, bn2g, bn2b, prelu)
    # Back to NCHW in the wrapper (layout plumbing outside the kernel).
    return jnp.transpose(out.reshape(C, B, H, W), (1, 0, 2, 3))


# --------------------- pure-JAX reference (NCHW, like torch) --------------- #
def _conv_nchw(x, w, padding):
    return jax.lax.conv_general_dilated(
        x, w, window_strides=(1, 1),
        padding=[(padding, padding), (padding, padding)],
        dimension_numbers=('NCHW', 'OIHW', 'NCHW'))


def _bn_train_nchw(x, gamma, beta):
    mean = jnp.mean(x, axis=(0, 2, 3), keepdims=True)
    var = jnp.mean(jnp.square(x - mean), axis=(0, 2, 3), keepdims=True)
    xn = (x - mean) / jnp.sqrt(var + EPS)
    return xn * gamma.reshape(1, -1, 1, 1) + beta.reshape(1, -1, 1, 1)


def _prelu(x, a):
    return jnp.where(x >= 0, x, a * x)


def ref_forward(x, params, theta=THETA):
    C = x.shape[1]
    w = params['w_cdc']
    y = _conv_nchw(x, w, 1) - theta * _conv_nchw(
        x, w.sum((2, 3))[:, :, None, None], 0)
    y = _prelu(_bn_train_nchw(y, params['bn1_gamma'], params['bn1_beta']),
               params['a1'])
    z = jnp.zeros((C, C, 1), w.dtype)
    wh = params['w_h']
    wh3 = jnp.concatenate([z, wh[:, :, :, 0], z, wh[:, :, :, 1],
                           wh[:, :, :, 2], wh[:, :, :, 3], z,
                           wh[:, :, :, 4], z], axis=2).reshape(C, C, 3, 3)
    out1 = _conv_nchw(y, wh3, 1) - theta * _conv_nchw(
        y, wh.sum((2, 3))[:, :, None, None], 0)
    wd = params['w_d']
    wd3 = jnp.concatenate([wd[:, :, :, 0], z, wd[:, :, :, 1], z,
                           wd[:, :, :, 2], z, wd[:, :, :, 3], z,
                           wd[:, :, :, 4]], axis=2).reshape(C, C, 3, 3)
    out2 = _conv_nchw(y, wd3, 1) - theta * _conv_nchw(
        y, wd.sum((2, 3))[:, :, None, None], 0)
    out = _prelu(_bn_train_nchw(0.5 * out1 + 0.5 * out2,
                                params['bn2_gamma'], params['bn2_beta']),
                 params['a2'])
    return out + x


# ---------------------------------- main ----------------------------------- #
if __name__ == "__main__":
    key = jax.random.PRNGKey(0)
    B, C, H, W = 2, 8, 16, 16   # mid_ch = 8
    k0, k1, k2, k3 = jax.random.split(key, 4)
    x = jax.random.normal(k0, (B, C, H, W), jnp.float32)

    params = {
        'w_cdc': jax.random.normal(k1, (C, C, 3, 3), jnp.float32) * 0.1,
        'w_h':   jax.random.normal(k2, (C, C, 1, 5), jnp.float32) * 0.1,
        'w_d':   jax.random.normal(k3, (C, C, 1, 5), jnp.float32) * 0.1,
        'bn1_gamma': jnp.ones((C,), jnp.float32),
        'bn1_beta':  jnp.zeros((C,), jnp.float32),
        'bn2_gamma': jnp.ones((C,), jnp.float32),
        'bn2_beta':  jnp.zeros((C,), jnp.float32),
        'a1': jnp.float32(0.25),   # PReLU default init
        'a2': jnp.float32(0.25),
    }

    out = jax.block_until_ready(cdc_vg_pallas(x, params))
    ref = jax.block_until_ready(ref_forward(x, params))
    np.testing.assert_allclose(np.asarray(out), np.asarray(ref),
                               rtol=3e-4, atol=3e-4)
    print("KERNEL_OK")
</pallas_src>

<mosaic_0001>
module attributes {stable_mosaic.version = 11 : i64} {
  func.func @kernel(%arg0: memref<8x512xf32, #tpu.memory_space<vmem>>, %arg1: memref<8x72xf32, #tpu.memory_space<vmem>>, %arg2: memref<8x72xf32, #tpu.memory_space<vmem>>, %arg3: memref<9x1x512xf32, #tpu.memory_space<vmem>>, %arg4: memref<8x1xf32, #tpu.memory_space<vmem>>, %arg5: memref<8x1xf32, #tpu.memory_space<vmem>>, %arg6: memref<8x1xf32, #tpu.memory_space<vmem>>, %arg7: memref<8x1xf32, #tpu.memory_space<vmem>>, %arg8: memref<2xf32, #tpu.memory_space<smem>>, %arg9: memref<8x512xf32, #tpu.memory_space<vmem>>) attributes {dimension_semantics = [], scalar_prefetch = 0 : i64, scratch_operands = 0 : i64, tpu.core_type = #tpu.core_type<tc>} {
    %c0 = arith.constant 0 : index
    %c0_0 = arith.constant 0 : index
    %0 = vector.load %arg0[%c0, %c0_0] : memref<8x512xf32, #tpu.memory_space<vmem>>, vector<8x512xf32>
    %c17_i32 = arith.constant 17 : i32
    %1 = tpu.dynamic_rotate %0 by %c17_i32 dim 1 : vector<8x512xf32>, i32 -> vector<8x512xf32>
    %c0_1 = arith.constant 0 : index
    %c0_2 = arith.constant 0 : index
    %c0_3 = arith.constant 0 : index
    %2 = vector.load %arg3[%c0_1, %c0_2, %c0_3] : memref<9x1x512xf32, #tpu.memory_space<vmem>>, vector<1x1x512xf32>
    %3 = vector.shape_cast %2 : vector<1x1x512xf32> to vector<1x512xf32>
    %4 = vector.broadcast %3 : vector<1x512xf32> to vector<8x512xf32>
    %5 = arith.mulf %1, %4 : vector<8x512xf32>
    %c16_i32 = arith.constant 16 : i32
    %6 = tpu.dynamic_rotate %0 by %c16_i32 dim 1 : vector<8x512xf32>, i32 -> vector<8x512xf32>
    %c1 = arith.constant 1 : index
    %c0_4 = arith.constant 0 : index
    %c0_5 = arith.constant 0 : index
    %7 = vector.load %arg3[%c1, %c0_4, %c0_5] : memref<9x1x512xf32, #tpu.memory_space<vmem>>, vector<1x1x512xf32>
    %8 = vector.shape_cast %7 : vector<1x1x512xf32> to vector<1x512xf32>
    %9 = vector.broadcast %8 : vector<1x512xf32> to vector<8x512xf32>
    %10 = arith.mulf %6, %9 : vector<8x512xf32>
    %c15_i32 = arith.constant 15 : i32
    %11 = tpu.dynamic_rotate %0 by %c15_i32 dim 1 : vector<8x512xf32>, i32 -> vector<8x512xf32>
    %c2 = arith.constant 2 : index
    %c0_6 = arith.constant 0 : index
    %c0_7 = arith.constant 0 : index
    %12 = vector.load %arg3[%c2, %c0_6, %c0_7] : memref<9x1x512xf32, #tpu.memory_space<vmem>>, vector<1x1x512xf32>
    %13 = vector.shape_cast %12 : vector<1x1x512xf32> to vector<1x512xf32>
    %14 = vector.broadcast %13 : vector<1x512xf32> to vector<8x512xf32>
    %15 = arith.mulf %11, %14 : vector<8x512xf32>
    %c1_i32 = arith.constant 1 : i32
    %16 = tpu.dynamic_rotate %0 by %c1_i32 dim 1 : vector<8x512xf32>, i32 -> vector<8x512xf32>
    %c3 = arith.constant 3 : index
    %c0_8 = arith.constant 0 : index
    %c0_9 = arith.constant 0 : index
    %17 = vector.load %arg3[%c3, %c0_8, %c0_9] : memref<9x1x512xf32, #tpu.memory_space<vmem>>, vector<1x1x512xf32>
    %18 = vector.shape_cast %17 : vector<1x1x512xf32> to vector<1x512xf32>
    %19 = vector.broadcast %18 : vector<1x512xf32> to vector<8x512xf32>
    %20 = arith.mulf %16, %19 : vector<8x512xf32>
    %c511_i32 = arith.constant 511 : i32
    %21 = tpu.dynamic_rotate %0 by %c511_i32 dim 1 : vector<8x512xf32>, i32 -> vector<8x512xf32>
    %c5 = arith.constant 5 : index
    %c0_10 = arith.constant 0 : index
    %c0_11 = arith.constant 0 : index
    %22 = vector.load %arg3[%c5, %c0_10, %c0_11] : memref<9x1x512xf32, #tpu.memory_space<vmem>>, vector<1x1x512xf32>
    %23 = vector.shape_cast %22 : vector<1x1x512xf32> to vector<1x512xf32>
    %24 = vector.broadcast %23 : vector<1x512xf32> to vector<8x512xf32>
    %25 = arith.mulf %21, %24 : vector<8x512xf32>
    %c497_i32 = arith.constant 497 : i32
    %26 = tpu.dynamic_rotate %0 by %c497_i32 dim 1 : vector<8x512xf32>, i32 -> vector<8x512xf32>
    %c6 = arith.constant 6 : index
    %c0_12 = arith.constant 0 : index
    %c0_13 = arith.constant 0 : index
    %27 = vector.load %arg3[%c6, %c0_12, %c0_13] : memref<9x1x512xf32, #tpu.memory_space<vmem>>, vector<1x1x512xf32>
    %28 = vector.shape_cast %27 : vector<1x1x512xf32> to vector<1x512xf32>
    %29 = vector.broadcast %28 : vector<1x512xf32> to vector<8x512xf32>
    %30 = arith.mulf %26, %29 : vector<8x512xf32>
    %c496_i32 = arith.constant 496 : i32
    %31 = tpu.dynamic_rotate %0 by %c496_i32 dim 1 : vector<8x512xf32>, i32 -> vector<8x512xf32>
    %c7 = arith.constant 7 : index
    %c0_14 = arith.constant 0 : index
    %c0_15 = arith.constant 0 : index
    %32 = vector.load %arg3[%c7, %c0_14, %c0_15] : memref<9x1x512xf32, #tpu.memory_space<vmem>>, vector<1x1x512xf32>
    %33 = vector.shape_cast %32 : vector<1x1x512xf32> to vector<1x512xf32>
    %34 = vector.broadcast %33 : vector<1x512xf32> to vector<8x512xf32>
    %35 = arith.mulf %31, %34 : vector<8x512xf32>
    %c495_i32 = arith.constant 495 : i32
    %36 = tpu.dynamic_rotate %0 by %c495_i32 dim 1 : vector<8x512xf32>, i32 -> vector<8x512xf32>
    %c8 = arith.constant 8 : index
    %c0_16 = arith.constant 0 : index
    %c0_17 = arith.constant 0 : index
    %37 = vector.load %arg3[%c8, %c0_16, %c0_17] : memref<9x1x512xf32, #tpu.memory_space<vmem>>, vector<1x1x512xf32>
    %38 = vector.shape_cast %37 : vector<1x1x512xf32> to vector<1x512xf32>
    %39 = vector.broadcast %38 : vector<1x512xf32> to vector<8x512xf32>
    %40 = arith.mulf %36, %39 : vector<8x512xf32>
    %41 = tpu.concatenate %5, %10, %15, %20, %0, %25, %30, %35, %40 in 0 : vector<8x512xf32>, vector<8x512xf32>, vector<8x512xf32>, vector<8x512xf32>, vector<8x512xf32>, vector<8x512xf32>, vector<8x512xf32>, vector<8x512xf32>, vector<8x512xf32> -> vector<72x512xf32>
    %c0_18 = arith.constant 0 : index
    %c0_19 = arith.constant 0 : index
    %42 = vector.load %arg1[%c0_18, %c0_19] : memref<8x72xf32, #tpu.memory_space<vmem>>, vector<8x72xf32>
    %cst = arith.constant dense<0.000000e+00> : vector<8x512xf32>
    %43 = tpu.matmul %42, %41, %cst {dimension_numbers = #tpu.dot_dimension_numbers<[1], [0], [0], [1], [0, 0, 1, 1], [], []>} : vector<8x72xf32>, vector<72x512xf32>, vector<8x512xf32> -> vector<8x512xf32>
    %c0_20 = arith.constant 0 : index
    %c0_21 = arith.constant 0 : index
    %44 = vector.load %arg4[%c0_20, %c0_21] : memref<8x1xf32, #tpu.memory_space<vmem>>, vector<8x1xf32>
    %c0_22 = arith.constant 0 : index
    %c0_23 = arith.constant 0 : index
    %45 = vector.load %arg5[%c0_22, %c0_23] : memref<8x1xf32, #tpu.memory_space<vmem>>, vector<8x1xf32>
    %c0_24 = arith.constant 0 : index
    %46 = memref.load %arg8[%c0_24] : memref<2xf32, #tpu.memory_space<smem>>
    %cst_25 = arith.constant dense<0.000000e+00> : vector<8xf32>
    %47 = vector.multi_reduction <add>, %43, %cst_25 [1] : vector<8x512xf32> to vector<8xf32>
    %48 = vector.shape_cast %47 : vector<8xf32> to vector<8x1xf32>
    %49 = arith.mulf %43, %43 : vector<8x512xf32>
    %cst_26 = arith.constant dense<0.000000e+00> : vector<8xf32>
    %50 = vector.multi_reduction <add>, %49, %cst_26 [1] : vector<8x512xf32> to vector<8xf32>
    %51 = vector.shape_cast %50 : vector<8xf32> to vector<8x1xf32>
    %cst_27 = arith.constant 0.001953125 : f32
    %52 = vector.broadcast %cst_27 : f32 to vector<8x1xf32>
    %53 = arith.mulf %48, %52 : vector<8x1xf32>
    %cst_28 = arith.constant 0.001953125 : f32
    %54 = vector.broadcast %cst_28 : f32 to vector<8x1xf32>
    %55 = arith.mulf %51, %54 : vector<8x1xf32>
    %56 = arith.mulf %53, %53 : vector<8x1xf32>
    %57 = arith.subf %55, %56 : vector<8x1xf32>
    %cst_29 = arith.constant 9.99999974E-6 : f32
    %58 = vector.broadcast %cst_29 : f32 to vector<8x1xf32>
    %59 = arith.addf %57, %58 : vector<8x1xf32>
    %60 = math.rsqrt %59 : vector<8x1xf32>
    %61 = arith.mulf %60, %44 : vector<8x1xf32>
    %62 = arith.mulf %53, %61 : vector<8x1xf32>
    %63 = arith.subf %45, %62 : vector<8x1xf32>
    %64 = vector.broadcast %61 : vector<8x1xf32> to vector<8x512xf32>
    %65 = arith.mulf %43, %64 : vector<8x512xf32>
    %66 = vector.broadcast %63 : vector<8x1xf32> to vector<8x512xf32>
    %67 = arith.addf %65, %66 : vector<8x512xf32>
    %cst_30 = arith.constant 0.000000e+00 : f32
    %68 = vector.broadcast %cst_30 : f32 to vector<8x512xf32>
    %69 = arith.cmpf oge, %67, %68 : vector<8x512xf32>
    %70 = vector.broadcast %46 : f32 to vector<8x512xf32>
    %71 = arith.mulf %70, %67 : vector<8x512xf32>
    %72 = arith.select %69, %67, %71 : vector<8x512xi1>, vector<8x512xf32>
    %c17_i32_31 = arith.constant 17 : i32
    %73 = tpu.dynamic_rotate %72 by %c17_i32_31 dim 1 : vector<8x512xf32>, i32 -> vector<8x512xf32>
    %c0_32 = arith.constant 0 : index
    %c0_33 = arith.constant 0 : index
    %c0_34 = arith.constant 0 : index
    %74 = vector.load %arg3[%c0_32, %c0_33, %c0_34] : memref<9x1x512xf32, #tpu.memory_space<vmem>>, vector<1x1x512xf32>
    %75 = vector.shape_cast %74 : vector<1x1x512xf32> to vector<1x512xf32>
    %76 = vector.broadcast %75 : vector<1x512xf32> to vector<8x512xf32>
    %77 = arith.mulf %73, %76 : vector<8x512xf32>
    %c16_i32_35 = arith.constant 16 : i32
    %78 = tpu.dynamic_rotate %72 by %c16_i32_35 dim 1 : vector<8x512xf32>, i32 -> vector<8x512xf32>
    %c1_36 = arith.constant 1 : index
    %c0_37 = arith.constant 0 : index
    %c0_38 = arith.constant 0 : index
    %79 = vector.load %arg3[%c1_36, %c0_37, %c0_38] : memref<9x1x512xf32, #tpu.memory_space<vmem>>, vector<1x1x512xf32>
    %80 = vector.shape_cast %79 : vector<1x1x512xf32> to vector<1x512xf32>
    %81 = vector.broadcast %80 : vector<1x512xf32> to vector<8x512xf32>
    %82 = arith.mulf %78, %81 : vector<8x512xf32>
    %c15_i32_39 = arith.constant 15 : i32
    %83 = tpu.dynamic_rotate %72 by %c15_i32_39 dim 1 : vector<8x512xf32>, i32 -> vector<8x512xf32>
    %c2_40 = arith.constant 2 : index
    %c0_41 = arith.constant 0 : index
    %c0_42 = arith.constant 0 : index
    %84 = vector.load %arg3[%c2_40, %c0_41, %c0_42] : memref<9x1x512xf32, #tpu.memory_space<vmem>>, vector<1x1x512xf32>
    %85 = vector.shape_cast %84 : vector<1x1x512xf32> to vector<1x512xf32>
    %86 = vector.broadcast %85 : vector<1x512xf32> to vector<8x512xf32>
    %87 = arith.mulf %83, %86 : vector<8x512xf32>
    %c1_i32_43 = arith.constant 1 : i32
    %88 = tpu.dynamic_rotate %72 by %c1_i32_43 dim 1 : vector<8x512xf32>, i32 -> vector<8x512xf32>
    %c3_44 = arith.constant 3 : index
    %c0_45 = arith.constant 0 : index
    %c0_46 = arith.constant 0 : index
    %89 = vector.load %arg3[%c3_44, %c0_45, %c0_46] : memref<9x1x512xf32, #tpu.memory_space<vmem>>, vector<1x1x512xf32>
    %90 = vector.shape_cast %89 : vector<1x1x512xf32> to vector<1x512xf32>
    %91 = vector.broadcast %90 : vector<1x512xf32> to vector<8x512xf32>
    %92 = arith.mulf %88, %91 : vector<8x512xf32>
    %c511_i32_47 = arith.constant 511 : i32
    %93 = tpu.dynamic_rotate %72 by %c511_i32_47 dim 1 : vector<8x512xf32>, i32 -> vector<8x512xf32>
    %c5_48 = arith.constant 5 : index
    %c0_49 = arith.constant 0 : index
    %c0_50 = arith.constant 0 : index
    %94 = vector.load %arg3[%c5_48, %c0_49, %c0_50] : memref<9x1x512xf32, #tpu.memory_space<vmem>>, vector<1x1x512xf32>
    %95 = vector.shape_cast %94 : vector<1x1x512xf32> to vector<1x512xf32>
    %96 = vector.broadcast %95 : vector<1x512xf32> to vector<8x512xf32>
    %97 = arith.mulf %93, %96 : vector<8x512xf32>
    %c497_i32_51 = arith.constant 497 : i32
    %98 = tpu.dynamic_rotate %72 by %c497_i32_51 dim 1 : vector<8x512xf32>, i32 -> vector<8x512xf32>
    %c6_52 = arith.constant 6 : index
    %c0_53 = arith.constant 0 : index
    %c0_54 = arith.constant 0 : index
    %99 = vector.load %arg3[%c6_52, %c0_53, %c0_54] : memref<9x1x512xf32, #tpu.memory_space<vmem>>, vector<1x1x512xf32>
    %100 = vector.shape_cast %99 : vector<1x1x512xf32> to vector<1x512xf32>
    %101 = vector.broadcast %100 : vector<1x512xf32> to vector<8x512xf32>
    %102 = arith.mulf %98, %101 : vector<8x512xf32>
    %c496_i32_55 = arith.constant 496 : i32
    %103 = tpu.dynamic_rotate %72 by %c496_i32_55 dim 1 : vector<8x512xf32>, i32 -> vector<8x512xf32>
    %c7_56 = arith.constant 7 : index
    %c0_57 = arith.constant 0 : index
    %c0_58 = arith.constant 0 : index
    %104 = vector.load %arg3[%c7_56, %c0_57, %c0_58] : memref<9x1x512xf32, #tpu.memory_space<vmem>>, vector<1x1x512xf32>
    %105 = vector.shape_cast %104 : vector<1x1x512xf32> to vector<1x512xf32>
    %106 = vector.broadcast %105 : vector<1x512xf32> to vector<8x512xf32>
    %107 = arith.mulf %103, %106 : vector<8x512xf32>
    %c495_i32_59 = arith.constant 495 : i32
    %108 = tpu.dynamic_rotate %72 by %c495_i32_59 dim 1 : vector<8x512xf32>, i32 -> vector<8x512xf32>
    %c8_60 = arith.constant 8 : index
    %c0_61 = arith.constant 0 : index
    %c0_62 = arith.constant 0 : index
    %109 = vector.load %arg3[%c8_60, %c0_61, %c0_62] : memref<9x1x512xf32, #tpu.memory_space<vmem>>, vector<1x1x512xf32>
    %110 = vector.shape_cast %109 : vector<1x1x512xf32> to vector<1x512xf32>
    %111 = vector.broadcast %110 : vector<1x512xf32> to vector<8x512xf32>
    %112 = arith.mulf %108, %111 : vector<8x512xf32>
    %113 = tpu.concatenate %77, %82, %87, %92, %72, %97, %102, %107, %112 in 0 : vector<8x512xf32>, vector<8x512xf32>, vector<8x512xf32>, vector<8x512xf32>, vector<8x512xf32>, vector<8x512xf32>, vector<8x512xf32>, vector<8x512xf32>, vector<8x512xf32> -> vector<72x512xf32>
    %c0_63 = arith.constant 0 : index
    %c0_64 = arith.constant 0 : index
    %114 = vector.load %arg2[%c0_63, %c0_64] : memref<8x72xf32, #tpu.memory_space<vmem>>, vector<8x72xf32>
    %cst_65 = arith.constant dense<0.000000e+00> : vector<8x512xf32>
    %115 = tpu.matmul %114, %113, %cst_65 {dimension_numbers = #tpu.dot_dimension_numbers<[1], [0], [0], [1], [0, 0, 1, 1], [], []>} : vector<8x72xf32>, vector<72x512xf32>, vector<8x512xf32> -> vector<8x512xf32>
    %c0_66 = arith.constant 0 : index
    %c0_67 = arith.constant 0 : index
    %116 = vector.load %arg6[%c0_66, %c0_67] : memref<8x1xf32, #tpu.memory_space<vmem>>, vector<8x1xf32>
    %c0_68 = arith.constant 0 : index
    %c0_69 = arith.constant 0 : index
    %117 = vector.load %arg7[%c0_68, %c0_69] : memref<8x1xf32, #tpu.memory_space<vmem>>, vector<8x1xf32>
    %c1_70 = arith.constant 1 : index
    %118 = memref.load %arg8[%c1_70] : memref<2xf32, #tpu.memory_space<smem>>
    %cst_71 = arith.constant dense<0.000000e+00> : vector<8xf32>
    %119 = vector.multi_reduction <add>, %115, %cst_71 [1] : vector<8x512xf32> to vector<8xf32>
    %120 = vector.shape_cast %119 : vector<8xf32> to vector<8x1xf32>
    %121 = arith.mulf %115, %115 : vector<8x512xf32>
    %cst_72 = arith.constant dense<0.000000e+00> : vector<8xf32>
    %122 = vector.multi_reduction <add>, %121, %cst_72 [1] : vector<8x512xf32> to vector<8xf32>
    %123 = vector.shape_cast %122 : vector<8xf32> to vector<8x1xf32>
    %cst_73 = arith.constant 0.001953125 : f32
    %124 = vector.broadcast %cst_73 : f32 to vector<8x1xf32>
    %125 = arith.mulf %120, %124 : vector<8x1xf32>
    %cst_74 = arith.constant 0.001953125 : f32
    %126 = vector.broadcast %cst_74 : f32 to vector<8x1xf32>
    %127 = arith.mulf %123, %126 : vector<8x1xf32>
    %128 = arith.mulf %125, %125 : vector<8x1xf32>
    %129 = arith.subf %127, %128 : vector<8x1xf32>
    %cst_75 = arith.constant 9.99999974E-6 : f32
    %130 = vector.broadcast %cst_75 : f32 to vector<8x1xf32>
    %131 = arith.addf %129, %130 : vector<8x1xf32>
    %132 = math.rsqrt %131 : vector<8x1xf32>
    %133 = arith.mulf %132, %116 : vector<8x1xf32>
    %134 = arith.mulf %125, %133 : vector<8x1xf32>
    %135 = arith.subf %117, %134 : vector<8x1xf32>
    %136 = vector.broadcast %133 : vector<8x1xf32> to vector<8x512xf32>
    %137 = arith.mulf %115, %136 : vector<8x512xf32>
    %138 = vector.broadcast %135 : vector<8x1xf32> to vector<8x512xf32>
    %139 = arith.addf %137, %138 : vector<8x512xf32>
    %cst_76 = arith.constant 0.000000e+00 : f32
    %140 = vector.broadcast %cst_76 : f32 to vector<8x512xf32>
    %141 = arith.cmpf oge, %139, %140 : vector<8x512xf32>
    %142 = vector.broadcast %118 : f32 to vector<8x512xf32>
    %143 = arith.mulf %142, %139 : vector<8x512xf32>
    %144 = arith.select %141, %139, %143 : vector<8x512xi1>, vector<8x512xf32>
    %c0_77 = arith.constant 0 : index
    %c0_78 = arith.constant 0 : index
    %145 = vector.load %arg0[%c0_77, %c0_78] : memref<8x512xf32, #tpu.memory_space<vmem>>, vector<8x512xf32>
    %146 = arith.addf %144, %145 : vector<8x512xf32>
    %c0_79 = arith.constant 0 : index
    %c0_80 = arith.constant 0 : index
    %147 = vector.load %arg9[%c0_79, %c0_80] : memref<8x512xf32, #tpu.memory_space<vmem>>, vector<8x512xf32>
    tpu.vector_store %arg9[%c0_79, %c0_80], %146 {strides = array<i32>} : memref<8x512xf32, #tpu.memory_space<vmem>>, vector<8x512xf32>,
    return
  }
}

</mosaic_0001>

<bundles_post_ra>
// kernel: cdc_vg_pallas.1
= control target key start
LH: loop header
LB: loop body
LE: loop exit
PB: predicated region body
PF: predicated region fallthrough
CT: control target
= control target key end

     0   :  { %14 = vsyncpa [#allocation3], 0  ;;  %s766_s12 = smov [#allocation2]   ;;  %s1399_s0 = inlined_call_operand.vmem [shape: f32[8,512], index: 0, kind: input, shape index: {}]   ;;  %s1400_s1 = inlined_call_operand.vmem [shape: f32[8,72], index: 1, kind: input, shape index: {}]   ;;  %s1401_s2 = inlined_call_operand.vmem [shape: f32[8,72], index: 2, kind: input, shape index: {}]   ;;  %s1402_s3 = inlined_call_operand.vmem [shape: f32[9,1,512], index: 3, kind: input, shape index: {}]   ;;  %s1403_s4 = inlined_call_operand.vmem [shape: f32[8,1], index: 4, kind: input, shape index: {}]   ;;  %s1404_s5 = inlined_call_operand.vmem [shape: f32[8,1], index: 5, kind: input, shape index: {}]   ;;  %s1405_s6 = inlined_call_operand.vmem [shape: f32[8,1], index: 6, kind: input, shape index: {}]   ;;  %s1406_s7 = inlined_call_operand.vmem [shape: f32[8,1], index: 7, kind: input, shape index: {}]   ;;  %s1407_s8 = inlined_call_operand.vmem [shape: f32[2], index: 8, kind: input, shape index: {}]   ;;  %s1408_s9 = inlined_call_operand.vmem [shape: f32[8,512], index: 9, kind: output, shape index: {}]  }
   0x1   :  { %s36_s11 = sshll.u32 %s1407_s8, 4  ;;  %s37_s11 = int_to_ptr.vmem [resolvable:$true] %s36_s11 }
   0x2   :  { %39 = dma.vmem_to_smem %s37_s11, 16, %s766_s12, [#allocation3]  }
   0x3   :  { %764 = dma.done.wait [#allocation3], 16  }
   0x4   :  { %765 = vsyncadd [#allocation3], 4294967280 }
   0x5   :  { %44 = sfence }
   0x6   :  { %v832_v0 = vld [vmem:[%s1399_s0 + $0x10] sm:$0xff]  ;;  %v837_v1 = vld [vmem:[%s1399_s0] sm:$0xff]  ;;  %s767_s17 = smov 112   ;;  %s768_s8 = smov 111   ;;  %v848_v2 = vld [vmem:[%s1399_s0 + $0x18] sm:$0xff]  ;;  %v57_v6 = vlaneseq  ;;  %vm275_vm8 = vcmask 588800  }
   0x7   :  { %222 = vrot.lane.b32.xlu1 %v832_v0, %s767_s17  ;;  %250 = vrot.lane.b32.xlu0 %v832_v0, %s768_s8  ;;  %s769_s20 = smov 113   ;;  %v859_v3 = vld [vmem:[%s1399_s0 + $0x8] sm:$0xff]  ;;  %s770_s23 = smov 127   ;;  %v920_v8 = vld [vmem:[%s1402_s3 + $0x20] sm:$0xf] }
   0x8   :  { %246 = vrot.lane.b32.xlu2 %v837_v1, %s768_s8  ;;  %s771_s24 = smov 1   ;;  %s772_s25 = smov 15   ;;  %v915_v7 = vand.u32 127, %v57_v6  ;;  %v262_v9 = vperm.slane %v920_v8, 0  ;;  %v263_v13 = vperm.slane %v920_v8, 1  ;;  %v264_v19 = vperm.slane %v920_v8, 2 }
   0x9   :  { %s773_s26 = smov 16   ;;  %s774_s27 = smov 17   ;;  %v936_v18 = vld [vmem:[%s1402_s3 + $0x1c] sm:$0xf]  ;;  %v265_v20 = vperm.slane %v920_v8, 3 }
   0xa   :  { %vm254_vm0 = vcmp.lt.s32.totalorder %v915_v7, 111  ;;  %vm226_vm1 = vcmp.lt.s32.totalorder %v915_v7, 112  ;;  %v236_v24 = vperm.slane %v936_v18, 2  ;;  %v955_v30 = vld [vmem:[%s1402_s3 + $0x18] sm:$0xf]  ;;  %vm198_vm2 = vcmp.lt.s32.totalorder %v915_v7, 113 }
   0xb   :  { %v208_v32 = vperm.slane %v955_v30, 2  ;;  %v237_v33 = vperm.slane %v936_v18, 3  ;;  %v209_v36 = vperm.slane %v955_v30, 3  ;;  %v977_v43 = vld [vmem:[%s1402_s3 + $0x14] sm:$0xf]  ;;  %vm170_vm3 = vcmp.lt.s32.totalorder %v915_v7, 127 }
   0xc   :  { %v180_v45 = vperm.slane %v977_v43, 2  ;;  %v234_v51 = vperm.slane %v936_v18, 0  ;;  %v235_v52 = vperm.slane %v936_v18, 1  ;;  %v181_v53 = vperm.slane %v977_v43, 3  ;;  %s361_s13 = sld [smem:[#allocation2]] }
   0xd   :  { %v206_v57 = vperm.slane %v955_v30, 0  ;;  %v207_v58 = vperm.slane %v955_v30, 1  ;;  %v179_v59 = vperm.slane %v977_v43, 1  ;;  %v178_v6 = vperm.slane %v977_v43, 0 }
   0xe   :  { %vm142_vm4 = vcmp.lt.s32.totalorder %v915_v7, 1  ;;  %vm114_vm5 = vcmp.lt.s32.totalorder %v915_v7, 15  ;;  %vm86_vm6 = vcmp.lt.s32.totalorder %v915_v7, 16  ;;  %vm59_vm7 = vcmp.lt.s32.totalorder %v915_v7, 17 }
   0xf   :  { %224 = vrot.lane.b32.xlu1 %v848_v2, %s767_s17  ;;  %252 = vrot.lane.b32.xlu0 %v848_v2, %s768_s8 }
  0x10   :  { %194 = vrot.lane.b32.xlu2 %v832_v0, %s769_s20 }
  0x17   :  { %196 = vrot.lane.b32.xlu0 %v848_v2, %s769_s20  ;;  %218 = vrot.lane.b32.xlu1 %v837_v1, %s767_s17 }
  0x18   :  { %248 = vrot.lane.b32.xlu2 %v859_v3, %s768_s8 }
  0x1f   :  { %166 = vrot.lane.b32.xlu0 %v832_v0, %s770_s23  ;;  %168 = vrot.lane.b32.xlu1 %v848_v2, %s770_s23 }
  0x20   :  { %190 = vrot.lane.b32.xlu2 %v837_v1, %s769_s20 }
  0x27   :  { %220 = vrot.lane.b32.xlu0 %v859_v3, %s767_s17  ;;  %162 = vrot.lane.b32.xlu1 %v837_v1, %s770_s23 }
  0x28   :  { %192 = vrot.lane.b32.xlu2 %v859_v3, %s769_s20 }
  0x2f   :  { %136 = vrot.lane.b32.xlu0 %v859_v3, %s771_s24  ;;  %138 = vrot.lane.b32.xlu1 %v832_v0, %s771_s24 }
  0x30   :  { %164 = vrot.lane.b32.xlu2 %v859_v3, %s770_s23 }
  0x37   :  { %108 = vrot.lane.b32.xlu0 %v859_v3, %s772_s25  ;;  %110 = vrot.lane.b32.xlu1 %v832_v0, %s772_s25 }
  0x38   :  { %140 = vrot.lane.b32.xlu2 %v848_v2, %s771_s24 }
  0x3f   :  { %80 = vrot.lane.b32.xlu0 %v859_v3, %s773_s26  ;;  %82 = vrot.lane.b32.xlu1 %v832_v0, %s773_s26 }
  0x40   :  { %112 = vrot.lane.b32.xlu2 %v848_v2, %s772_s25 }
  0x47   :  { %134 = vrot.lane.b32.xlu0 %v837_v1, %s771_s24  ;;  %51 = vrot.lane.b32.xlu1 %v859_v3, %s774_s27 }
  0x48   :  { %53 = vrot.lane.b32.xlu2 %v832_v0, %s774_s27 }
  0x4f   :  { %84 = vrot.lane.b32.xlu0 %v848_v2, %s773_s26  ;;  %106 = vrot.lane.b32.xlu1 %v837_v1, %s772_s25 }
  0x50   :  { %55 = vrot.lane.b32.xlu2 %v848_v2, %s774_s27 }
  0x57   :  { %78 = vrot.lane.b32.xlu0 %v837_v1, %s773_s26  ;;  %49 = vrot.lane.b32.xlu1 %v837_v1, %s774_s27 }
  0x62   :  { %v247_v4 = vpop.permute.xlu2 %246 }
  0x6a   :  { %v913_v5 = vpop.permute.xlu2 %194 }
  0x72   :  { %v249_v10 = vpop.permute.xlu2 %248 }
  0x73   :  { %v257_v11 = vsel %vm254_vm0, %v247_v4, %v249_v10 }
  0x74   :  { %v270_v12 = vmul.f32 %v262_v9, %v257_v11 }
  0x76   :  { %286 = vmatpush.msra.mxu0 %v270_v12  ;;  %v1019_v12 = vld [vmem:[%s1402_s3 + $0xc] sm:$0xf] }
  0x79   :  { %v223_v14 = vpop.permute.xlu1 %222  ;;  %v251_v15 = vpop.permute.xlu0 %250 }
  0x7a   :  { %v256_v16 = vsel %vm254_vm0, %v249_v10, %v251_v15  ;;  %v191_v21 = vpop.permute.xlu2 %190 }
  0x7b   :  { %v271_v17 = vmul.f32 %v263_v13, %v256_v16 }
  0x7d   :  { %306 = vmatpush.msra.mxu1 %v271_v17 }
  0x81   :  { %v225_v22 = vpop.permute.xlu1 %224  ;;  %v253_v23 = vpop.permute.xlu0 %252 }
  0x82   :  { %v227_v25 = vsel %vm226_vm1, %v223_v14, %v225_v22  ;;  %v255_v26 = vsel %vm254_vm0, %v251_v15, %v253_v23  ;;  %v258_v27 = vsel %vm254_vm0, %v253_v23, %v247_v4  ;;  %v193_v40 = vpop.permute.xlu2 %192  ;;  %v153_v23 = vperm.slane %v1019_v12, 3 }
  0x83   :  { %v272_v28 = vmul.f32 %v264_v19, %v255_v26  ;;  %v273_v29 = vmul.f32 %v265_v20, %v258_v27  ;;  %v244_v31 = vmul.f32 %v236_v24, %v227_v25  ;;  %v200_v54 = vsel %vm198_vm2, %v193_v40, %v913_v5 }
  0x84   :  { %v201_v60 = vsel %vm198_vm2, %v191_v21, %v193_v40  ;;  %v215_v15 = vmul.f32 %v207_v58, %v200_v54 }
  0x85   :  { %326 = vmatpush.msra.mxu2 %v272_v28  ;;  %346 = vmatpush.msra.mxu3 %v273_v29 }
  0x87   :  { %327 = vmatpush.msra.mxu2 %v244_v31 }
  0x89   :  { %v197_v34 = vpop.permute.xlu0 %196  ;;  %v219_v35 = vpop.permute.xlu1 %218 }
  0x8a   :  { %v199_v37 = vsel %vm198_vm2, %v913_v5, %v197_v34  ;;  %v202_v38 = vsel %vm198_vm2, %v197_v34, %v191_v21  ;;  %v230_v39 = vsel %vm226_vm1, %v225_v22, %v219_v35  ;;  %v165_v50 = vpop.permute.xlu2 %164  ;;  %v152_v22 = vperm.slane %v1019_v12, 2 }
  0x8b   :  { %v216_v41 = vmul.f32 %v208_v32, %v199_v37  ;;  %v245_v42 = vmul.f32 %v237_v33, %v230_v39  ;;  %v217_v44 = vmul.f32 %v209_v36, %v202_v38 }
  0x8d   :  { %328 = vmatpush.msra.mxu2 %v216_v41  ;;  %347 = vmatpush.msra.mxu3 %v245_v42  ;;  %v1062_v42 = vld [vmem:[%s1402_s3 + $0x4] sm:$0xf] }
  0x8f   :  { %348 = vmatpush.msra.mxu3 %v217_v44  ;;  %v96_v44 = vperm.slane %v1062_v42, 2 }
  0x91   :  { %v167_v46 = vpop.permute.xlu0 %166  ;;  %v169_v47 = vpop.permute.xlu1 %168 }
  0x92   :  { %v171_v48 = vsel %vm170_vm3, %v167_v46, %v169_v47  ;;  %v172_v10 = vsel %vm170_vm3, %v165_v50, %v167_v46  ;;  %v141_v16 = vpop.permute.xlu2 %140 }
  0x93   :  { %v188_v49 = vmul.f32 %v180_v45, %v171_v48  ;;  %v187_v21 = vmul.f32 %v179_v59, %v172_v10 }
  0x95   :  { %329 = vmatpush.msra.mxu2 %v188_v49 }
  0x97   :  { %330 = vmatpush.msra.mxu2 %v832_v0 }
  0x99   :  { %v221_v55 = vpop.permute.xlu0 %220  ;;  %v163_v56 = vpop.permute.xlu1 %162 }
  0x9a   :  { %v228_v61 = vsel %vm226_vm1, %v221_v55, %v223_v14  ;;  %v229_v62 = vsel %vm226_vm1, %v219_v35, %v221_v55  ;;  %v174_v63 = vsel %vm170_vm3, %v169_v47, %v163_v56  ;;  %v173_v11 = vsel %vm170_vm3, %v163_v56, %v165_v50  ;;  %v113_v34 = vpop.permute.xlu2 %112  ;;  %v1073_v50 = vld [vmem:[%s1402_s3] sm:$0xf] }
  0x9b   :  { %v242_v0 = vmul.f32 %v234_v51, %v229_v62  ;;  %v243_v4 = vmul.f32 %v235_v52, %v228_v61  ;;  %v189_v5 = vmul.f32 %v181_v53, %v174_v63  ;;  %v214_v14 = vmul.f32 %v206_v57, %v201_v60 }
  0x9c   :  { %v186_v17 = vmul.f32 %v178_v6, %v173_v11  ;;  %v150_v55 = vperm.slane %v1019_v12, 0  ;;  %v151_v56 = vperm.slane %v1019_v12, 1  ;;  %v68_v60 = vperm.slane %v1073_v50, 2 }
  0x9d   :  { %287 = vmatpush.msra.mxu0 %v242_v0  ;;  %307 = vmatpush.msra.mxu1 %v243_v4 }
  0x9e   :  { %349 = vmatpush.msra.mxu3 %v189_v5 }
  0x9f   :  { %288 = vmatpush.msra.mxu0 %v214_v14  ;;  %308 = vmatpush.msra.mxu1 %v215_v15  ;;  %v274_v14 = vld [vmem:[%s1400_s1] sm:$0xff] }
  0xa0   :  { %350 = vmatpush.msra.mxu3 %v848_v2  ;;  %v1046_v2 = vld [vmem:[%s1402_s3 + $0x8] sm:$0xf] }
  0xa1   :  { %v137_v25 = vpop.permute.xlu0 %136  ;;  %v139_v26 = vpop.permute.xlu1 %138  ;;  %289 = vmatpush.msra.mxu0 %v186_v17  ;;  %309 = vmatpush.msra.mxu1 %v187_v21  ;;  %v124_v35 = vperm.slane %v1046_v2, 2  ;;  %v125_v37 = vperm.slane %v1046_v2, 3  ;;  %v122_v15 = vperm.slane %v1046_v2, 0  ;;  %v97_v17 = vperm.slane %v1062_v42, 3 }
  0xa2   :  { %v144_v27 = vsel %vm142_vm4, %v137_v25, %v139_v26  ;;  %v143_v28 = vsel %vm142_vm4, %v139_v26, %v141_v16  ;;  %v54_v54 = vpop.permute.xlu2 %53 }
  0xa3   :  { %v160_v29 = vmul.f32 %v152_v22, %v144_v27  ;;  %v161_v31 = vmul.f32 %v153_v23, %v143_v28  ;;  %290 = vmatpush.msra.mxu0 %v837_v1  ;;  %310 = vmatpush.msra.mxu1 %v859_v3 }
  0xa5   :  { %331 = vmatpush.msra.mxu2 %v160_v29  ;;  %351 = vmatpush.msra.mxu3 %v161_v31  ;;  %v69_v31 = vperm.slane %v1073_v50, 3 }
  0xa9   :  { %v109_v38 = vpop.permute.xlu0 %108  ;;  %v111_v39 = vpop.permute.xlu1 %110 }
  0xaa   :  { %v116_v1 = vsel %vm114_vm5, %v109_v38, %v111_v39  ;;  %v115_v3 = vsel %vm114_vm5, %v111_v39, %v113_v34  ;;  %v56_v21 = vpop.permute.xlu2 %55 }
  0xab   :  { %v132_v40 = vmul.f32 %v124_v35, %v116_v1  ;;  %v133_v41 = vmul.f32 %v125_v37, %v115_v3  ;;  %v60_v39 = vsel %vm59_vm7, %v54_v54, %v56_v21 }
  0xad   :  { %332 = vmatpush.msra.mxu2 %v132_v40  ;;  %352 = vmatpush.msra.mxu3 %v133_v41  ;;  %v95_v41 = vperm.slane %v1062_v42, 1 }
  0xb1   :  { %v81_v46 = vpop.permute.xlu0 %80  ;;  %v83_v47 = vpop.permute.xlu1 %82 }
  0xb2   :  { %v88_v48 = vsel %vm86_vm6, %v81_v46, %v83_v47 }
  0xb3   :  { %v104_v49 = vmul.f32 %v96_v44, %v88_v48 }
  0xb5   :  { %333 = vmatpush.msra.mxu2 %v104_v49  ;;  %v66_v49 = vperm.slane %v1073_v50, 0 }
  0xb9   :  { %v135_v61 = vpop.permute.xlu0 %134  ;;  %v52_v62 = vpop.permute.xlu1 %51 }
  0xba   :  { %v145_v63 = vsel %vm142_vm4, %v135_v61, %v137_v25  ;;  %v146_v0 = vsel %vm142_vm4, %v141_v16, %v135_v61  ;;  %v61_v4 = vsel %vm59_vm7, %v52_v62, %v54_v54  ;;  %v123_v16 = vperm.slane %v1046_v2, 1 }
  0xbb   :  { %v158_v5 = vmul.f32 %v150_v55, %v146_v0  ;;  %v159_v10 = vmul.f32 %v151_v56, %v145_v63  ;;  %v76_v11 = vmul.f32 %v68_v60, %v61_v4  ;;  %v1409_v54 = vperm.slane %v1073_v50, 1 }
  0xbd   :  { %291 = vmatpush.msra.mxu0 %v158_v5  ;;  %311 = vmatpush.msra.mxu1 %v159_v10 }
  0xbe   :  { %334 = vmatpush.msra.mxu2 %v76_v11 }
  0xbf   :  { %725 = vmatmul.msk.f32.vlgmr.msra.gmra.mxu2 %vm275_vm8, %v274_v14 }
  0xc1   :  { %v85_v25 = vpop.permute.xlu0 %84  ;;  %v107_v26 = vpop.permute.xlu1 %106 }
  0xc2   :  { %v87_v27 = vsel %vm86_vm6, %v83_v47, %v85_v25  ;;  %v117_v28 = vsel %vm114_vm5, %v107_v26, %v109_v38  ;;  %v118_v29 = vsel %vm114_vm5, %v113_v34, %v107_v26  ;;  %v77_v34 = vmul.f32 %v69_v31, %v60_v39 }
  0xc3   :  { %v130_v1 = vmul.f32 %v122_v15, %v118_v29  ;;  %v131_v3 = vmul.f32 %v123_v16, %v117_v28  ;;  %v105_v40 = vmul.f32 %v97_v17, %v87_v27  ;;  %v94_v38 = vperm.slane %v1062_v42, 0 }
  0xc5   :  { %292 = vmatpush.msra.mxu0 %v130_v1  ;;  %312 = vmatpush.msra.mxu1 %v131_v3 }
  0xc6   :  { %353 = vmatpush.msra.mxu3 %v105_v40 }
  0xc8   :  { %354 = vmatpush.msra.mxu3 %v77_v34 }
  0xc9   :  { %v79_v47 = vpop.permute.xlu0 %78  ;;  %v50_v48 = vpop.permute.xlu1 %49  ;;  %726 = vmatmul.msk.f32.vlgmr.msra.gmra.mxu3 %vm275_vm8, %v274_v14 }
  0xca   :  { %v89_v61 = vsel %vm86_vm6, %v79_v47, %v81_v46  ;;  %v90_v63 = vsel %vm86_vm6, %v85_v25, %v79_v47  ;;  %v62_v0 = vsel %vm59_vm7, %v50_v48, %v52_v62  ;;  %v63_v4 = vsel %vm59_vm7, %v56_v21, %v50_v48 }
  0xcb   :  { %v102_v5 = vmul.f32 %v94_v38, %v90_v63  ;;  %v103_v10 = vmul.f32 %v95_v41, %v89_v61  ;;  %v74_v46 = vmul.f32 %v66_v49, %v63_v4  ;;  %v75_v11 = vmul.f32 %v1409_v54, %v62_v0 }
  0xcd   :  { %293 = vmatpush.msra.mxu0 %v102_v5  ;;  %313 = vmatpush.msra.mxu1 %v103_v10 }
  0xcf   :  { %294 = vmatpush.msra.mxu0 %v74_v46  ;;  %314 = vmatpush.msra.mxu1 %v75_v11 }
  0xd0   :  { %723 = vmatmul.msk.f32.vlgmr.msra.gmra.mxu0 %vm275_vm8, %v274_v14  ;;  %724 = vmatmul.msk.f32.vlgmr.msra.gmra.mxu1 %vm275_vm8, %v274_v14  ;;  %v775_v14 = vmov 0  }
  0xd1   :  { %742 = vset.pattern.permute.xlu1 %v775_v14  ;;  %743 = vset.pattern.permute.xlu0 %v775_v14 }
 0x142   :  { %v336_v62 = vpop.f32.mrf.mxu2 }
 0x143   :  { %v369_v39 = vmul.f32 %v336_v62, %v336_v62 }
 0x14c   :  { %v356_v21 = vpop.f32.mrf.mxu3 }
 0x14d   :  { %v1138_v25 = vpop.f32.mrf.mxu0  ;;  %v316_v26 = vpop.f32.mrf.mxu1  ;;  %v370_v3 = vmul.f32 %v356_v21, %v356_v21 }
 0x14e   :  { %v367_v27 = vmul.f32 %v1138_v25, %v1138_v25  ;;  %v362_v28 = vadd.f32 %v316_v26, %v1138_v25  ;;  %v368_v29 = vmul.f32 %v316_v26, %v316_v26 }
 0x150   :  { %v363_v1 = vadd.f32 %v362_v28, %v336_v62  ;;  %v371_v40 = vadd.f32 %v368_v29, %v367_v27 }
 0x152   :  { %v364_v34 = vadd.f32 %v363_v1, %v356_v21  ;;  %v372_v47 = vadd.f32 %v371_v40, %v369_v39  ;;  %v359_v39 = vld [vmem:[%s1403_s4] sm:$0xff] }
 0x154   :  { %365 = vadd.xlane.f32.xlu2 %v364_v34  ;;  %v373_v48 = vadd.f32 %v372_v47, %v370_v3  ;;  %v360_v47 = vld [vmem:[%s1404_s5] sm:$0xff] }
 0x156   :  { %374 = vadd.xlane.f32.xlu0 %v373_v48 }
 0x1c7   :  { %v366_v61 = vpop.xlane.xlu2 %365 }
 0x1c8   :  { %v376_v63 = vmul.f32 0.001953125, %v366_v61 }
 0x1c9   :  { %v375_v0 = vpop.xlane.xlu0 %374 }
 0x1ca   :  { %v378_v4 = vmul.f32 %v376_v63, %v376_v63  ;;  %v377_v5 = vmul.f32 0.001953125, %v375_v0 }
 0x1cc   :  { %v379_v10 = vsub.f32 %v377_v5, %v378_v4  ;;  %v416_v4 = vstv %s361_s13 }
 0x1ce   :  { %v380_v46 = vadd.f32 1e-05, %v379_v10 }
 0x1d0   :  { %744 = vrsqrt.f32 %v380_v46  ;;  %vm387_vm10 = vweird.f32 %v380_v46 }
 0x1d6   :  { %v745_v11 = vpop.eup %744 }
 0x1d7   :  { %v382_v28 = vmul.f32 %v745_v11, %v380_v46  ;;  %vm388_vm9 = vweird.f32 %v745_v11 }
 0x1d8   :  { %vm389_vm11 = vmor %vm387_vm10, %vm388_vm9 }
 0x1d9   :  { %v383_v54 = vmul.f32 %v745_v11, %v382_v28 }
 0x1db   :  { %v384_v27 = vmul.f32 0.5, %v383_v54 }
 0x1dd   :  { %v385_v29 = vsub.f32 1.5, %v384_v27 }
 0x1df   :  { %v386_v1 = vmul.f32 %v745_v11, %v385_v29 }
 0x1e1   :  { %v390_v3 = vsel %vm389_vm11, %v745_v11, %v386_v1 }
 0x1e2   :  { %v391_v40 = vmul.f32 %v390_v3, %v359_v39 }
 0x1e4   :  { %396 = vperm.xlu1 %742, %v391_v40   ;;  %v392_v34 = vmul.f32 %v391_v40, %v376_v63 }
 0x1e6   :  { %v393_v48 = vsub.f32 %v360_v47, %v392_v34 }
 0x1ec   :  { %405 = vperm.xlu1 %742, %v393_v48  }
 0x256   :  { %v397_v54 = vpop.permute.xlu1 %396 }
 0x257   :  { %v401_v14 = vmul.f32 %v397_v54, %v336_v62  ;;  %v402_v61 = vmul.f32 %v397_v54, %v356_v21  ;;  %v400_v46 = vmul.f32 %v397_v54, %v316_v26  ;;  %v399_v21 = vmul.f32 %v397_v54, %v1138_v25 }
 0x25e   :  { %v406_v0 = vpop.permute.xlu1 %405 }
 0x25f   :  { %v410_v5 = vadd.f32 %v406_v0, %v401_v14  ;;  %v411_v10 = vadd.f32 %v406_v0, %v402_v61  ;;  %v409_v63 = vadd.f32 %v406_v0, %v400_v46  ;;  %v408_v26 = vadd.f32 %v406_v0, %v399_v21 }
 0x261   :  { %vm414_vm12 = vcmp.ge.f32.partialorder %v410_v5, 0.0  ;;  %vm415_vm13 = vcmp.ge.f32.partialorder %v411_v10, 0.0  ;;  %v419_v11 = vmul.f32 %v416_v4, %v410_v5  ;;  %v420_v28 = vmul.f32 %v416_v4, %v411_v10 }
 0x262   :  { %v418_v62 = vmul.f32 %v416_v4, %v409_v63  ;;  %vm413_vm14 = vcmp.ge.f32.partialorder %v409_v63, 0.0  ;;  %v417_v1 = vmul.f32 %v416_v4, %v408_v26  ;;  %vm412_vm15 = vcmp.ge.f32.partialorder %v408_v26, 0.0 }
 0x263   :  { %v1149_v27 = vsel %vm414_vm12, %v410_v5, %v419_v11  ;;  %v1151_v29 = vsel %vm415_vm13, %v411_v10, %v420_v28 }
 0x264   :  { %527 = vrot.lane.b32.xlu2 %v1151_v29, %s767_s17  ;;  %509 = vrot.lane.b32.xlu0 %v1149_v27, %s769_s20  ;;  %v1160_v39 = vsel %vm413_vm14, %v409_v63, %v418_v62  ;;  %v1168_v3 = vsel %vm412_vm15, %v408_v26, %v417_v1 }
 0x265   :  { %541 = vrot.lane.b32.xlu1 %v1149_v27, %s768_s8 }
 0x26c   :  { %493 = vrot.lane.b32.xlu0 %v1149_v27, %s770_s23  ;;  %539 = vrot.lane.b32.xlu2 %v1160_v39, %s768_s8 }
 0x26d   :  { %543 = vrot.lane.b32.xlu1 %v1151_v29, %s768_s8 }
 0x274   :  { %523 = vrot.lane.b32.xlu0 %v1160_v39, %s767_s17  ;;  %505 = vrot.lane.b32.xlu2 %v1168_v3, %s769_s20 }
 0x275   :  { %525 = vrot.lane.b32.xlu1 %v1149_v27, %s767_s17 }
 0x27c   :  { %475 = vrot.lane.b32.xlu0 %v1160_v39, %s771_s24  ;;  %507 = vrot.lane.b32.xlu2 %v1160_v39, %s769_s20 }
 0x27d   :  { %537 = vrot.lane.b32.xlu1 %v1168_v3, %s768_s8 }
 0x284   :  { %459 = vrot.lane.b32.xlu0 %v1160_v39, %s772_s25  ;;  %491 = vrot.lane.b32.xlu2 %v1160_v39, %s770_s23 }
 0x285   :  { %511 = vrot.lane.b32.xlu1 %v1151_v29, %s769_s20 }
 0x28c   :  { %443 = vrot.lane.b32.xlu0 %v1160_v39, %s773_s26  ;;  %479 = vrot.lane.b32.xlu2 %v1151_v29, %s771_s24 }
 0x28d   :  { %521 = vrot.lane.b32.xlu1 %v1168_v3, %s767_s17 }
 0x294   :  { %473 = vrot.lane.b32.xlu0 %v1168_v3, %s771_s24  ;;  %463 = vrot.lane.b32.xlu2 %v1151_v29, %s772_s25 }
 0x295   :  { %495 = vrot.lane.b32.xlu1 %v1151_v29, %s770_s23 }
 0x29c   :  { %447 = vrot.lane.b32.xlu0 %v1151_v29, %s773_s26  ;;  %429 = vrot.lane.b32.xlu2 %v1149_v27, %s774_s27 }
 0x29d   :  { %489 = vrot.lane.b32.xlu1 %v1168_v3, %s770_s23  ;;  %s731_s23 = sld [smem:[#allocation2 + $0x1]] }
 0x2a4   :  { %441 = vrot.lane.b32.xlu0 %v1168_v3, %s773_s26  ;;  %431 = vrot.lane.b32.xlu2 %v1151_v29, %s774_s27 }
 0x2a5   :  { %477 = vrot.lane.b32.xlu1 %v1149_v27, %s771_s24 }
 0x2ad   :  { %461 = vrot.lane.b32.xlu1 %v1149_v27, %s772_s25 }
 0x2b5   :  { %445 = vrot.lane.b32.xlu1 %v1149_v27, %s773_s26 }
 0x2bd   :  { %427 = vrot.lane.b32.xlu1 %v1160_v39, %s774_s27 }
 0x2be   :  { %v528_v25 = vpop.permute.xlu2 %527 }
 0x2c5   :  { %457 = vrot.lane.b32.xlu1 %v1168_v3, %s772_s25 }
 0x2c6   :  { %v540_v40 = vpop.permute.xlu2 %539 }
 0x2cd   :  { %425 = vrot.lane.b32.xlu1 %v1168_v3, %s774_s27 }
 0x2ce   :  { %v506_v34 = vpop.permute.xlu2 %505 }
 0x2d6   :  { %v510_v47 = vpop.permute.xlu0 %509  ;;  %v508_v61 = vpop.permute.xlu2 %507 }
 0x2d7   :  { %v542_v48 = vpop.permute.xlu1 %541  ;;  %v514_v63 = vsel %vm198_vm2, %v508_v61, %v510_v47 }
 0x2d8   :  { %v546_v54 = vsel %vm254_vm0, %v540_v40, %v542_v48  ;;  %v518_v1 = vmul.f32 %v514_v63, %v207_v58 }
 0x2d9   :  { %v550_v14 = vmul.f32 %v546_v54, %v263_v13 }
 0x2db   :  { %584 = vmatpush.msrb.mxu1 %v550_v14 }
 0x2de   :  { %v494_v0 = vpop.permute.xlu0 %493  ;;  %v492_v11 = vpop.permute.xlu2 %491 }
 0x2df   :  { %v544_v4 = vpop.permute.xlu1 %543 }
 0x2e0   :  { %v545_v5 = vsel %vm254_vm0, %v542_v48, %v544_v4 }
 0x2e1   :  { %v551_v10 = vmul.f32 %v545_v5, %v264_v19  ;;  %v498_v19 = vsel %vm170_vm3, %v492_v11, %v494_v0 }
 0x2e2   :  { %v502_v48 = vmul.f32 %v498_v19, %v179_v59 }
 0x2e3   :  { %604 = vmatpush.msrb.mxu2 %v551_v10 }
 0x2e6   :  { %v524_v46 = vpop.permute.xlu0 %523 }
 0x2e7   :  { %v526_v28 = vpop.permute.xlu1 %525 }
 0x2e8   :  { %v529_v13 = vsel %vm226_vm1, %v526_v28, %v528_v25  ;;  %v530_v62 = vsel %vm226_vm1, %v524_v46, %v526_v28 }
 0x2e9   :  { %v534_v21 = vmul.f32 %v530_v62, %v235_v52  ;;  %v535_v26 = vmul.f32 %v529_v13, %v236_v24  ;;  %v480_v13 = vpop.permute.xlu2 %479 }
 0x2eb   :  { %585 = vmatpush.msrb.mxu1 %v534_v21  ;;  %605 = vmatpush.msrb.mxu2 %v535_v26 }
 0x2ed   :  { %586 = vmatpush.msrb.mxu1 %v518_v1 }
 0x2ee   :  { %v476_v54 = vpop.permute.xlu0 %475 }
 0x2ef   :  { %587 = vmatpush.msrb.mxu1 %v502_v48  ;;  %v538_v14 = vpop.permute.xlu1 %537 }
 0x2f0   :  { %v547_v52 = vsel %vm254_vm0, %v538_v14, %v540_v40  ;;  %v548_v24 = vsel %vm254_vm0, %v544_v4, %v538_v14 }
 0x2f1   :  { %588 = vmatpush.msrb.mxu1 %v1160_v39  ;;  %v549_v5 = vmul.f32 %v547_v52, %v262_v9  ;;  %v552_v58 = vmul.f32 %v548_v24, %v265_v20  ;;  %v515_v9 = vsel %vm198_vm2, %v506_v34, %v508_v61  ;;  %v464_v21 = vpop.permute.xlu2 %463 }
 0x2f2   :  { %v517_v61 = vmul.f32 %v515_v9, %v206_v57 }
 0x2f3   :  { %564 = vmatpush.msrb.mxu0 %v549_v5  ;;  %624 = vmatpush.msrb.mxu3 %v552_v58  ;;  %v553_v5 = vld [vmem:[%s1401_s2] sm:$0xff] }
 0x2f6   :  { %v1255_v59 = vpop.permute.xlu0 %459 }
 0x2f7   :  { %v512_v10 = vpop.permute.xlu1 %511 }
 0x2f8   :  { %v513_v28 = vsel %vm198_vm2, %v510_v47, %v512_v10  ;;  %v516_v8 = vsel %vm198_vm2, %v512_v10, %v506_v34 }
 0x2f9   :  { %v519_v40 = vmul.f32 %v513_v28, %v208_v32  ;;  %v520_v34 = vmul.f32 %v516_v8, %v209_v36 }
 0x2fb   :  { %606 = vmatpush.msrb.mxu2 %v519_v40 }
 0x2fe   :  { %v1261_v4 = vpop.permute.xlu0 %443 }
 0x2ff   :  { %v522_v39 = vpop.permute.xlu1 %521 }
 0x300   :  { %v531_v20 = vsel %vm226_vm1, %v522_v39, %v524_v46  ;;  %v532_v63 = vsel %vm226_vm1, %v528_v25, %v522_v39 }
 0x301   :  { %v533_v47 = vmul.f32 %v531_v20, %v234_v51  ;;  %v536_v32 = vmul.f32 %v532_v63, %v237_v33 }
 0x303   :  { %565 = vmatpush.msrb.mxu0 %v533_v47  ;;  %625 = vmatpush.msrb.mxu3 %v536_v32 }
 0x305   :  { %566 = vmatpush.msrb.mxu0 %v517_v61  ;;  %626 = vmatpush.msrb.mxu3 %v520_v34 }
 0x306   :  { %v474_v46 = vpop.permute.xlu0 %473 }
 0x307   :  { %v483_v25 = vsel %vm142_vm4, %v474_v46, %v476_v54  ;;  %v496_v62 = vpop.permute.xlu1 %495 }
 0x308   :  { %v497_v18 = vsel %vm170_vm3, %v494_v0, %v496_v62  ;;  %v486_v33 = vmul.f32 %v483_v25, %v151_v56 }
 0x309   :  { %v503_v51 = vmul.f32 %v497_v18, %v180_v45  ;;  %v484_v45 = vsel %vm142_vm4, %v480_v13, %v474_v46 }
 0x30a   :  { %589 = vmatpush.msrb.mxu1 %v486_v33 }
 0x30b   :  { %607 = vmatpush.msrb.mxu2 %v503_v51 }
 0x30d   :  { %608 = vmatpush.msrb.mxu2 %v1149_v27  ;;  %v485_v27 = vmul.f32 %v484_v45, %v150_v55 }
 0x30f   :  { %v490_v30 = vpop.permute.xlu1 %489 }
 0x310   :  { %v499_v36 = vsel %vm170_vm3, %v490_v30, %v492_v11  ;;  %v500_v57 = vsel %vm170_vm3, %v496_v62, %v490_v30 }
 0x311   :  { %v501_v0 = vmul.f32 %v499_v36, %v178_v6  ;;  %v504_v56 = vmul.f32 %v500_v57, %v181_v53 }
 0x313   :  { %567 = vmatpush.msrb.mxu0 %v501_v0  ;;  %627 = vmatpush.msrb.mxu3 %v504_v56 }
 0x315   :  { %568 = vmatpush.msrb.mxu0 %v1168_v3  ;;  %628 = vmatpush.msrb.mxu3 %v1151_v29  ;;  %v430_v3 = vpop.permute.xlu2 %429 }
 0x317   :  { %569 = vmatpush.msrb.mxu0 %v485_v27  ;;  %v478_v11 = vpop.permute.xlu1 %477 }
 0x318   :  { %v481_v6 = vsel %vm142_vm4, %v478_v11, %v480_v13  ;;  %v482_v43 = vsel %vm142_vm4, %v476_v54, %v478_v11 }
 0x319   :  { %v487_v53 = vmul.f32 %v482_v43, %v152_v22  ;;  %v488_v26 = vmul.f32 %v481_v6, %v153_v23  ;;  %v448_v23 = vpop.permute.xlu0 %447  ;;  %v637_v43 = vld [vmem:[%s1405_s6] sm:$0xff] }
 0x31b   :  { %609 = vmatpush.msrb.mxu2 %v487_v53  ;;  %629 = vmatpush.msrb.mxu3 %v488_v26 }
 0x31d   :  { %v432_v12 = vpop.permute.xlu2 %431 }
 0x31e   :  { %v433_v54 = vsel %vm59_vm7, %v430_v3, %v432_v12 }
 0x31f   :  { %v462_v29 = vpop.permute.xlu1 %461  ;;  %v440_v24 = vmul.f32 %v433_v54, %v69_v31  ;;  %v694_v54 = vstv %s731_s23 }
 0x320   :  { %v465_v55 = vsel %vm114_vm5, %v462_v29, %v464_v21  ;;  %v466_v19 = vsel %vm114_vm5, %v1255_v59, %v462_v29 }
 0x321   :  { %v471_v1 = vmul.f32 %v466_v19, %v124_v35  ;;  %v472_v22 = vmul.f32 %v465_v55, %v125_v37  ;;  %v638_v55 = vld [vmem:[%s1406_s7] sm:$0xff] }
 0x323   :  { %610 = vmatpush.msrb.mxu2 %v471_v1  ;;  %630 = vmatpush.msrb.mxu3 %v472_v22 }
 0x327   :  { %v446_v48 = vpop.permute.xlu1 %445 }
 0x328   :  { %v449_v14 = vsel %vm86_vm6, %v446_v48, %v448_v23  ;;  %v450_v52 = vsel %vm86_vm6, %v1261_v4, %v446_v48 }
 0x329   :  { %v455_v35 = vmul.f32 %v450_v52, %v96_v44  ;;  %v456_v37 = vmul.f32 %v449_v14, %v97_v17  ;;  %v442_v17 = vpop.permute.xlu0 %441 }
 0x32a   :  { %v451_v31 = vsel %vm86_vm6, %v442_v17, %v1261_v4  ;;  %v452_v40 = vsel %vm86_vm6, %v448_v23, %v442_v17 }
 0x32b   :  { %611 = vmatpush.msrb.mxu2 %v455_v35  ;;  %631 = vmatpush.msrb.mxu3 %v456_v37  ;;  %v453_v4 = vmul.f32 %v452_v40, %v94_v38  ;;  %v454_v20 = vmul.f32 %v451_v31, %v95_v41 }
 0x32d   :  { %632 = vmatpush.msrb.mxu3 %v440_v24 }
 0x32e   :  { %730 = vmatmul.msk.f32.vlgmr.msrb.gmra.mxu3 %vm275_vm8, %v553_v5 }
 0x32f   :  { %v428_v58 = vpop.permute.xlu1 %427 }
 0x330   :  { %v434_v10 = vsel %vm59_vm7, %v428_v58, %v430_v3 }
 0x331   :  { %v439_v44 = vmul.f32 %v434_v10, %v68_v60 }
 0x333   :  { %612 = vmatpush.msrb.mxu2 %v439_v44 }
 0x334   :  { %729 = vmatmul.msk.f32.vlgmr.msrb.gmra.mxu2 %vm275_vm8, %v553_v5 }
 0x337   :  { %v458_v28 = vpop.permute.xlu1 %457 }
 0x338   :  { %v467_v39 = vsel %vm114_vm5, %v458_v28, %v1255_v59  ;;  %v468_v9 = vsel %vm114_vm5, %v464_v21, %v458_v28 }
 0x339   :  { %v469_v60 = vmul.f32 %v468_v9, %v122_v15  ;;  %v470_v8 = vmul.f32 %v467_v39, %v123_v16  ;;  %v1410_v16 = vperm.slane %v1073_v50, 1  ;;  %v748_v39 = vld [vmem:[%s1399_s0] sm:$0xff] }
 0x33b   :  { %570 = vmatpush.msrb.mxu0 %v469_v60  ;;  %590 = vmatpush.msrb.mxu1 %v470_v8  ;;  %v749_v60 = vld [vmem:[%s1399_s0 + $0x8] sm:$0xff] }
 0x33d   :  { %571 = vmatpush.msrb.mxu0 %v453_v4  ;;  %591 = vmatpush.msrb.mxu1 %v454_v20  ;;  %v750_v4 = vld [vmem:[%s1399_s0 + $0x10] sm:$0xff] }
 0x33f   :  { %v426_v59 = vpop.permute.xlu1 %425 }
 0x340   :  { %v435_v63 = vsel %vm59_vm7, %v426_v59, %v428_v58  ;;  %v436_v15 = vsel %vm59_vm7, %v432_v12, %v426_v59  ;;  %v751_v59 = vld [vmem:[%s1399_s0 + $0x18] sm:$0xff] }
 0x341   :  { %v437_v2 = vmul.f32 %v436_v15, %v66_v49  ;;  %v438_v47 = vmul.f32 %v435_v63, %v1410_v16 }
 0x343   :  { %572 = vmatpush.msrb.mxu0 %v437_v2  ;;  %592 = vmatpush.msrb.mxu1 %v438_v47 }
 0x344   :  { %727 = vmatmul.msk.f32.vlgmr.msrb.gmra.mxu0 %vm275_vm8, %v553_v5  ;;  %728 = vmatmul.msk.f32.vlgmr.msrb.gmra.mxu1 %vm275_vm8, %v553_v5 }
 0x3b1   :  { %v634_v38 = vpop.f32.mrf.mxu3 }
 0x3b2   :  { %v648_v49 = vmul.f32 %v634_v38, %v634_v38 }
 0x3b7   :  { %v614_v42 = vpop.f32.mrf.mxu2 }
 0x3b8   :  { %v647_v46 = vmul.f32 %v614_v42, %v614_v42 }
 0x3c1   :  { %v574_v41 = vpop.f32.mrf.mxu0  ;;  %v594_v32 = vpop.f32.mrf.mxu1 }
 0x3c2   :  { %v645_v61 = vmul.f32 %v574_v41, %v574_v41  ;;  %v640_v34 = vadd.f32 %v594_v32, %v574_v41  ;;  %v646_v7 = vmul.f32 %v594_v32, %v594_v32 }
 0x3c4   :  { %v649_v13 = vadd.f32 %v646_v7, %v645_v61  ;;  %v641_v25 = vadd.f32 %v640_v34, %v614_v42 }
 0x3c6   :  { %v642_v62 = vadd.f32 %v641_v25, %v634_v38  ;;  %v650_v50 = vadd.f32 %v649_v13, %v647_v46 }
 0x3c8   :  { %643 = vadd.xlane.f32.xlu2 %v642_v62  ;;  %v651_v18 = vadd.f32 %v650_v50, %v648_v49 }
 0x3ca   :  { %652 = vadd.xlane.f32.xlu0 %v651_v18 }
 0x43b   :  { %v644_v33 = vpop.xlane.xlu2 %643 }
 0x43c   :  { %v654_v51 = vmul.f32 0.001953125, %v644_v33 }
 0x43d   :  { %v653_v30 = vpop.xlane.xlu0 %652 }
 0x43e   :  { %v656_v36 = vmul.f32 %v654_v51, %v654_v51  ;;  %v655_v57 = vmul.f32 0.001953125, %v653_v30 }
 0x440   :  { %v657_v21 = vsub.f32 %v655_v57, %v656_v36 }
 0x442   :  { %v658_v0 = vadd.f32 1e-05, %v657_v21 }
 0x444   :  { %746 = vrsqrt.f32 %v658_v0  ;;  %vm665_vm1 = vweird.f32 %v658_v0 }
 0x44a   :  { %v747_v56 = vpop.eup %746 }
 0x44b   :  { %v660_v45 = vmul.f32 %v747_v56, %v658_v0  ;;  %vm666_vm0 = vweird.f32 %v747_v56 }
 0x44c   :  { %vm667_vm2 = vmor %vm665_vm1, %vm666_vm0 }
 0x44d   :  { %v661_v27 = vmul.f32 %v747_v56, %v660_v45 }
 0x44f   :  { %v662_v11 = vmul.f32 0.5, %v661_v27 }
 0x451   :  { %v663_v6 = vsub.f32 1.5, %v662_v11 }
 0x453   :  { %v664_v53 = vmul.f32 %v747_v56, %v663_v6 }
 0x455   :  { %v668_v26 = vsel %vm667_vm2, %v747_v56, %v664_v53 }
 0x456   :  { %v669_v3 = vmul.f32 %v668_v26, %v637_v43 }
 0x458   :  { %674 = vperm.xlu1 %742, %v669_v3   ;;  %v670_v29 = vmul.f32 %v669_v3, %v654_v51 }
 0x45a   :  { %v671_v19 = vsub.f32 %v638_v55, %v670_v29 }
 0x460   :  { %683 = vperm.xlu1 %742, %v671_v19  }
 0x4ca   :  { %v675_v1 = vpop.permute.xlu1 %674 }
 0x4cb   :  { %v677_v22 = vmul.f32 %v675_v1, %v574_v41  ;;  %v678_v12 = vmul.f32 %v675_v1, %v594_v32  ;;  %v679_v23 = vmul.f32 %v675_v1, %v614_v42  ;;  %v680_v48 = vmul.f32 %v675_v1, %v634_v38 }
 0x4d2   :  { %v684_v14 = vpop.permute.xlu1 %683 }
 0x4d3   :  { %v686_v52 = vadd.f32 %v684_v14, %v677_v22  ;;  %v687_v35 = vadd.f32 %v684_v14, %v678_v12  ;;  %v688_v37 = vadd.f32 %v684_v14, %v679_v23  ;;  %v689_v24 = vadd.f32 %v684_v14, %v680_v48 }
 0x4d5   :  { %vm690_vm3 = vcmp.ge.f32.partialorder %v686_v52, 0.0  ;;  %vm691_vm4 = vcmp.ge.f32.partialorder %v687_v35, 0.0  ;;  %vm692_vm5 = vcmp.ge.f32.partialorder %v688_v37, 0.0  ;;  %vm693_vm6 = vcmp.ge.f32.partialorder %v689_v24, 0.0 }
 0x4d6   :  { %v695_v5 = vmul.f32 %v694_v54, %v686_v52  ;;  %v696_v58 = vmul.f32 %v694_v54, %v687_v35  ;;  %v697_v10 = vmul.f32 %v694_v54, %v688_v37  ;;  %v698_v44 = vmul.f32 %v694_v54, %v689_v24 }
 0x4d8   :  { %v699_v17 = vsel %vm690_vm3, %v686_v52, %v695_v5  ;;  %v700_v28 = vsel %vm691_vm4, %v687_v35, %v696_v58  ;;  %v701_v31 = vsel %vm692_vm5, %v688_v37, %v697_v10  ;;  %v702_v40 = vsel %vm693_vm6, %v689_v24, %v698_v44 }
 0x4d9   :  { %v703_v9 = vadd.f32 %v748_v39, %v699_v17  ;;  %v704_v8 = vadd.f32 %v749_v60, %v700_v28  ;;  %v705_v20 = vadd.f32 %v750_v4, %v701_v31  ;;  %v706_v63 = vadd.f32 %v751_v59, %v702_v40 }
 0x4db   :  { %707 = vst [vmem:[%s1408_s9] sm:$0xff] %v703_v9 }
 0x4dc   :  { %708 = vst [vmem:[%s1408_s9 + $0x8] sm:$0xff] %v704_v8 }
 0x4dd   :  { %709 = vst [vmem:[%s1408_s9 + $0x10] sm:$0xff] %v705_v20 }
 0x4de   :  { %710 = vst [vmem:[%s1408_s9 + $0x18] sm:$0xff] %v706_v63 }
 0x4df   :  { %715 = vsyncpa [#allocation3], 1 }

</bundles_post_ra>
